<compile_context>
chip_gen: v7x
topology: tpu7x:2x2x1
jax: 0.10.0
libtpu: 0.0.40
codegen_flags: <defaults>
</compile_context>

<pallas_src>
import functools
import math

import jax
import jax.numpy as jnp
from jax.experimental import pallas as pl
from jax.experimental.pallas import tpu as pltpu


_MAX_TILE_BYTES = 8 * 1024 * 1024      # target x-tile size (6-8 MiB per review)
_PE_REPS_MAX = 16                      # max static unroll of pe-wide slab adds


# ----------------------------- kernels ---------------------------------------

def _add_pe_kernel(x_ref, pe_ref, o_ref, *, reps, pe_w):
    """out = x + pe (computed in f32).  x/o blocks: (t_s, reps*pe_w); pe: (t_s, pe_w).

    The batch replication of pe is `reps` static, 128-lane-aligned slab adds:
    no materialized tiled-pe intermediate.
    """
    pe = pe_ref[...]                                        # f32
    for r in range(reps):
        sl = slice(r * pe_w, (r + 1) * pe_w)
        o_ref[:, sl] = (x_ref[:, sl].astype(jnp.float32) + pe).astype(o_ref.dtype)


def _dropout_block(x_ref, pe_ref, o_ref, bits, *, reps, pe_w, keep_thr, scale):
    """Fused add + inverted dropout.  `bits` is an int32 Ref or array shaped like
    the x block; keep iff (bits & 0x7FFFFFFF) < keep_thr (signed-safe compare)."""
    pe = pe_ref[...]                                        # f32
    thr = jnp.int32(keep_thr)
    scl = jnp.float32(scale)                                # scale stays in f32
    for r in range(reps):
        sl = slice(r * pe_w, (r + 1) * pe_w)
        y = x_ref[:, sl].astype(jnp.float32) + pe
        rbits = bits[:, sl] & jnp.int32(0x7FFFFFFF)         # 31 unbiased bits
        keep = rbits < thr                                  # P(keep) = 1 - p
        o_ref[:, sl] = jnp.where(keep, y * scl, 0.0).astype(o_ref.dtype)


def _add_pe_dropout_bits_kernel(x_ref, pe_ref, bits_ref, o_ref, *,
                                reps, pe_w, keep_thr, scale):
    """Portable dropout path: random bits are a regular (pre-generated) input."""
    _dropout_block(x_ref, pe_ref, o_ref, bits_ref,
                   reps=reps, pe_w=pe_w, keep_thr=keep_thr, scale=scale)


def _add_pe_dropout_prng_kernel(x_ref, pe_ref, seed_ref, o_ref, *,
                                reps, pe_w, keep_thr, scale):
    """TPU-only dropout path: in-kernel hardware PRNG (no extra HBM bits traffic)."""
    pid = pl.program_id(0) * pl.num_programs(1) + pl.program_id(1)
    pltpu.prng_seed(seed_ref[0] + pid)                      # independent per tile
    bits = pltpu.prng_random_bits(x_ref.shape)
    if bits.dtype != jnp.int32:
        bits = pltpu.bitcast(bits, jnp.int32)
    _dropout_block(x_ref, pe_ref, o_ref, bits,
                   reps=reps, pe_w=pe_w, keep_thr=keep_thr, scale=scale)


# --------------------------- parameter setup ----------------------------------

def make_positional_encoding_table(d_model, max_len=5000, dtype=jnp.float32):
    """Deterministic pe buffer, identical to the PyTorch __init__ math.
    Returned shape is (max_len, 1, d_model) like the registered buffer."""
    position = jnp.arange(max_len, dtype=jnp.float32)[:, None]
    div_term = jnp.exp(jnp.arange(0, d_model, 2, dtype=jnp.float32)
                       * (-math.log(10000.0) / d_model))
    pe = jnp.zeros((max_len, d_model), jnp.float32)
    pe = pe.at[:, 0::2].set(jnp.sin(position * div_term))
    pe = pe.at[:, 1::2].set(jnp.cos(position * div_term))
    return pe[:, None, :].astype(dtype)


# ------------------------------ tiling ----------------------------------------

def _default_vmem_limit_bytes():
    """Generation-aware scoped-VMEM ceiling: ~48 MiB on v7x (64 MiB physical),
    64 MiB on v5e/v6e (128 MiB physical); safe fallback when no TPU is present."""
    try:
        cap = getattr(pltpu.get_tpu_info(), "vmem_capacity_bytes", None)
        if cap:
            return min(int(cap) * 3 // 4, 64 * 1024 * 1024)
    except Exception:
        pass
    return 48 * 1024 * 1024


def _largest_divisor_leq(n, cap):
    for d in range(min(n, cap), 0, -1):
        if n % d == 0:
            return d
    return 1


def _plan_tiles(S, W, D, itemsize, vmem_limit, max_tile_bytes, needs_bits):
    """Pick (t_s, w_blk, pe_w, reps) for the lane-dense (S, W=B*D) view.

    w_blk (block lane width) is a multiple of 128 (or the full W); pe_w is a
    128-lane-aligned multiple of D that divides w_blk, with reps = w_blk // pe_w
    kept small so the in-kernel unroll stays tiny and pe HBM traffic negligible.
    """
    budget = max(vmem_limit - 4 * 1024 * 1024, 2 * 1024 * 1024)
    bits_b = 4 if needs_bits else 0

    r_unit = 128 // math.gcd(D, 128)            # smallest r with (r*D) % 128 == 0
    base_w = r_unit * D
    if base_w >= W or (W % base_w) != 0:
        base_w = W                              # tiny / awkward widths: no col split

    if base_w == W:
        u_blk, w_blk = 1, W
    else:
        n_units = W // base_w
        # Split columns only if 8 double-buffered rows at full width won't fit.
        per_row_budget = budget // (2 * 8)
        u_max = max(1, per_row_budget // (base_w * (2 * itemsize + bits_b + 4)))
        u_blk = min(n_units, u_max)
        w_blk = u_blk * base_w

    reps = _largest_divisor_leq(u_blk, _PE_REPS_MAX) if base_w != W else 1
    pe_w = w_blk // reps

    row_bytes = w_blk * (2 * itemsize + bits_b) + pe_w * 4
    t_s = budget // (2 * row_bytes)                              # double-buffered
    t_s = min(t_s, max(1, max_tile_bytes // (w_blk * itemsize)))  # ~8 MiB x tiles
    if t_s >= S:
        t_s = S
    else:
        t_s = max(8, (t_s // 8) * 8)
        t_s = min(t_s, S)
    return int(t_s), int(w_blk), int(pe_w), int(reps)


# ------------------------------ wrapper ----------------------------------------

def positional_encoding_forward(x, pe, *, dropout_p=0.1, training=False, seed=0,
                                donate_x=False, use_hw_prng=None,
                                vmem_limit_bytes=None,
                                max_tile_bytes=_MAX_TILE_BYTES):
    """x: (S, B, D); pe: (max_len, 1, D) or (max_len, D).  Returns (S, B, D).

    Dropout is identity unless training and dropout_p > 0 (PyTorch semantics).
    donate_x=True enables input_output_aliases (only useful if the caller really
    donates x; otherwise XLA inserts a defensive copy).
    """
    S, B, D = x.shape
    if pe.ndim == 3:
        pe = pe[:, 0, :]
    pe_s = pe[:S].astype(jnp.float32)               # (S, D); add is done in f32
    W = B * D
    x2d = x.reshape(S, W)                           # free row-major, lane-dense view
    itemsize = jnp.dtype(x.dtype).itemsize

    p = float(dropout_p)
    apply_dropout = bool(training) and p > 0.0
    if apply_dropout and p >= 1.0:                  # nn.Dropout(p=1) zeroes everything
        return jnp.zeros_like(x)

    if use_hw_prng is None:
        use_hw_prng = jax.default_backend() == "tpu"
    needs_bits = apply_dropout and not use_hw_prng

    vmem_limit = int(vmem_limit_bytes) if vmem_limit_bytes else _default_vmem_limit_bytes()
    t_s, w_blk, pe_w, reps = _plan_tiles(S, W, D, itemsize, vmem_limit,
                                         max_tile_bytes, needs_bits)
    pe_rep = jnp.tile(pe_s, (1, pe_w // D)) if pe_w != D else pe_s      # (S, pe_w)

    grid = (pl.cdiv(S, t_s), pl.cdiv(W, w_blk))
    x_spec = pl.BlockSpec((t_s, w_blk), lambda i, j: (i, j))
    pe_spec = pl.BlockSpec((t_s, pe_w), lambda i, j: (i, 0))
    out_spec = pl.BlockSpec((t_s, w_blk), lambda i, j: (i, j))
    out_shape = jax.ShapeDtypeStruct((S, W), x.dtype)

    cparams = pltpu.CompilerParams(
        dimension_semantics=("parallel", "parallel"),
        vmem_limit_bytes=vmem_limit,
    )
    io_alias = {0: 0} if donate_x else {}
    xbytes = S * W * itemsize
    cost = pl.CostEstimate(
        flops=S * W * (4 if apply_dropout else 1),
        transcendentals=0,
        bytes_accessed=2 * xbytes + pe_rep.size * 4 + (S * W * 4 if needs_bits else 0),
    )

    if not apply_dropout:
        out2d = pl.pallas_call(
            functools.partial(_add_pe_kernel, reps=reps, pe_w=pe_w),
            out_shape=out_shape, grid=grid,
            in_specs=[x_spec, pe_spec], out_specs=out_spec,
            input_output_aliases=io_alias,
            compiler_params=cparams, cost_estimate=cost,
        )(x2d, pe_rep)
        return out2d.reshape(S, B, D)

    keep_thr = min(int(round((1.0 - p) * 2147483648.0)), 2147483647)   # 31-bit compare
    scale = 1.0 / (1.0 - p)

    if use_hw_prng:
        # TODO(synk): torch.nn.Dropout's exact RNG stream is not reproducible here;
        # semantics match (each element is 0 or (x+pe)/(1-p)) but mask bits differ.
        seed_arr = jnp.asarray([seed], dtype=jnp.int32)
        kernel = functools.partial(_add_pe_dropout_prng_kernel, reps=reps, pe_w=pe_w,
                                   keep_thr=keep_thr, scale=scale)
        out2d = pl.pallas_call(
            kernel, out_shape=out_shape, grid=grid,
            in_specs=[x_spec, pe_spec,
                      pl.BlockSpec(memory_space=pltpu.MemorySpace.SMEM)],
            out_specs=out_spec,
            input_output_aliases=io_alias,
            compiler_params=cparams, cost_estimate=cost,
        )(x2d, pe_rep, seed_arr)
    else:
        # Portable fallback (CPU / interpret sandboxes): pre-generated random bits
        # streamed in like x.  Costs one extra int32 read per element but never
        # touches TPU-only PRNG primitives, so it lowers everywhere.
        bits = jax.random.bits(jax.random.PRNGKey(seed), (S, W), dtype=jnp.uint32)
        bits = jax.lax.bitcast_convert_type(bits, jnp.int32)
        bits_spec = pl.BlockSpec((t_s, w_blk), lambda i, j: (i, j))
        kernel = functools.partial(_add_pe_dropout_bits_kernel, reps=reps, pe_w=pe_w,
                                   keep_thr=keep_thr, scale=scale)
        out2d = pl.pallas_call(
            kernel, out_shape=out_shape, grid=grid,
            in_specs=[x_spec, pe_spec, bits_spec], out_specs=out_spec,
            input_output_aliases=io_alias,
            compiler_params=cparams, cost_estimate=cost,
        )(x2d, pe_rep, bits)
    return out2d.reshape(S, B, D)


# -------------------------------- main -----------------------------------------

if __name__ == "__main__":
    # Small shapes consistent with the module: seq=8, batch=2, d_model=32.
    S, B, D = 8, 2, 32
    MAX_LEN = 64

    key = jax.random.PRNGKey(0)
    x = jax.random.normal(key, (S, B, D), dtype=jnp.float32)
    pe = make_positional_encoding_table(D, max_len=MAX_LEN)

    # 1) Eval-mode forward (dropout is identity), deterministic.
    out = positional_encoding_forward(x, pe, dropout_p=0.1, training=False)
    out = jax.block_until_ready(out)
    ref = x + pe[:S]
    assert out.shape == (S, B, D)
    assert jnp.allclose(out, ref, atol=1e-6, rtol=1e-6)

    # 2) Larger case with a small tile budget so the grid has multiple row blocks
    #    and the in-kernel pe slab loop (reps > 1) is exercised.
    S2, B2, D2 = 64, 4, 128
    x2 = jax.random.normal(jax.random.PRNGKey(1), (S2, B2, D2), dtype=jnp.float32)
    pe2 = make_positional_encoding_table(D2, max_len=128)
    out2 = positional_encoding_forward(x2, pe2, training=False,
                                       max_tile_bytes=32 * 1024)
    out2 = jax.block_until_ready(out2)
    assert jnp.allclose(out2, x2 + pe2[:S2], atol=1e-6, rtol=1e-6)

    # 3) Training-mode forward with fused inverted dropout: each element must be
    #    exactly 0 or (x+pe)/(1-p).  (HW PRNG on TPU, pre-generated bits otherwise.)
    p = 0.1
    out3 = positional_encoding_forward(x, pe, dropout_p=p, training=True, seed=123)
    out3 = jax.block_until_ready(out3)
    y = x + pe[:S]
    keep_val = y / (1.0 - p)
    ok = jnp.isclose(out3, 0.0, atol=1e-8) | jnp.isclose(out3, keep_val,
                                                         atol=1e-5, rtol=1e-5)
    assert out3.shape == (S, B, D)
    assert bool(jnp.all(ok))

    print("KERNEL_OK")
</pallas_src>

<mosaic_0001>
module attributes {stable_mosaic.version = 11 : i64} {
  func.func @_add_pe_kernel(%arg0: i32, %arg1: i32, %arg2: memref<8x64xf32, #tpu.memory_space<vmem>>, %arg3: memref<8x64xf32, #tpu.memory_space<vmem>>, %arg4: memref<8x64xf32, #tpu.memory_space<vmem>>) attributes {dimension_semantics = [#tpu.dimension_semantics<parallel>, #tpu.dimension_semantics<parallel>], iteration_bounds = array<i64: 1, 1>, scalar_prefetch = 0 : i64, scratch_operands = 0 : i64, tpu.core_type = #tpu.core_type<tc>, window_params = [{transform_indices = @transform_0, window_bounds = array<i64: 8, 64>}, {transform_indices = @transform_1, window_bounds = array<i64: 8, 64>}, {transform_indices = @transform_2, window_bounds = array<i64: 8, 64>}]} {
    %c0 = arith.constant 0 : index
    %c0_0 = arith.constant 0 : index
    %0 = vector.load %arg3[%c0, %c0_0] : memref<8x64xf32, #tpu.memory_space<vmem>>, vector<8x64xf32>
    %c0_1 = arith.constant 0 : index
    %c0_2 = arith.constant 0 : index
    %1 = vector.load %arg2[%c0_1, %c0_2] : memref<8x64xf32, #tpu.memory_space<vmem>>, vector<8x64xf32>
    %2 = arith.addf %1, %0 : vector<8x64xf32>
    %c0_3 = arith.constant 0 : index
    %c0_4 = arith.constant 0 : index
    %3 = vector.load %arg4[%c0_3, %c0_4] : memref<8x64xf32, #tpu.memory_space<vmem>>, vector<8x64xf32>
    tpu.vector_store %arg4[%c0_3, %c0_4], %2 {strides = array<i32>} : memref<8x64xf32, #tpu.memory_space<vmem>>, vector<8x64xf32>,
    return
  }
  func.func @transform_0(%arg0: i32, %arg1: i32) -> (i32, i32) {
    %c0_i32 = arith.constant 0 : i32
    return %arg0, %arg1 : i32, i32
  }
  func.func @transform_1(%arg0: i32, %arg1: i32) -> (i32, i32) {
    %c0_i32 = arith.constant 0 : i32
    %c0_i32_0 = arith.constant 0 : i32
    return %arg0, %c0_i32 : i32, i32
  }
  func.func @transform_2(%arg0: i32, %arg1: i32) -> (i32, i32) {
    %c0_i32 = arith.constant 0 : i32
    return %arg0, %arg1 : i32, i32
  }
}

</mosaic_0001>

<bundles_post_ra>
// kernel: tpu_custom_call.1
= control target key start
LH: loop header
LB: loop body
LE: loop exit
PB: predicated region body
PF: predicated region fallthrough
CT: control target
= control target key end

     0   :  { %7 = vsyncpa [#allocation3], 0  ;;  %s186_s0 = inlined_call_operand.hbm [shape: f32[8,64], index: 0, kind: input, shape index: {}]   ;;  %s187_s1 = inlined_call_operand.hbm [shape: f32[8,64], index: 1, kind: input, shape index: {}]   ;;  %s188_s2 = inlined_call_operand.hbm [shape: f32[8,64], index: 2, kind: output, shape index: {}]  }
   0x1   :  { %8 = vsyncpa [#allocation6], 0 }
   0x2   :  { %9 = vsyncpa [#allocation4], 0  ;;  %s132_s9 = smov [#allocation2]   ;;  %s133_s11 = smov [#allocation5]  }
   0x3   :  { %s16_s10 = sshll.u32 %s132_s9, 4  ;;  %s26_s12 = sshll.u32 %s133_s11, 4  ;;  %s17_s10 = int_to_ptr.vmem [resolvable:$true] %s16_s10  ;;  %s27_s12 = int_to_ptr.vmem [resolvable:$true] %s26_s12 }
   0x4   :  { %s60_s15 = scalar_lea.hbm %s186_s0, 128 }
   0x5   :  { %p61_p0 = scmp.ne.s32.totalorder %s186_s0, %s60_s15  ;;  %p64_p1 = scmp.lt.u32.totalorder %s60_s15, %s186_s0 }
   0x7   :  { %p66_p2 = pnand %p64_p1, %p61_p0 }
   0x9   :  { %69 = shalt.err (!%p66_p2)
}
   0xa   :  { %s70_s20 = scalar_lea.vmem %s17_s10, 128  ;;  %p75_p4 = scmp.lt.s32.totalorder %s17_s10, %s17_s10 }
   0xb   :  { %p71_p3 = scmp.ne.s32.totalorder %s17_s10, %s70_s20  ;;  %p76_p5 = scmp.lt.s32.totalorder %s70_s20, %s70_s20 }
   0xd   :  { %p77_p6 = por %p76_p5, %p75_p4 }
   0xf   :  { %p78_p7 = pnand %p77_p6, %p71_p3 }
  0x11   :  { %81 = shalt.err (!%p78_p7)
}
  0x12   :  { %19 = dma.hbm_to_vmem [thread:$0]  %s186_s0, 128, %s17_s10, [#allocation3]  }
  0x13   :  { %s82_s25 = scalar_lea.hbm %s187_s1, 128 }
  0x14   :  { %p83_p8 = scmp.ne.s32.totalorder %s187_s1, %s82_s25  ;;  %p86_p9 = scmp.lt.u32.totalorder %s82_s25, %s187_s1 }
  0x16   :  { %p88_p10 = pnand %p86_p9, %p83_p8 }
  0x18   :  { %91 = shalt.err (!%p88_p10)
}
  0x19   :  { %s92_s30 = scalar_lea.vmem %s27_s12, 128  ;;  %p97_p12 = scmp.lt.s32.totalorder %s27_s12, %s27_s12 }
  0x1a   :  { %p93_p11 = scmp.ne.s32.totalorder %s27_s12, %s92_s30  ;;  %p98_p13 = scmp.lt.s32.totalorder %s92_s30, %s92_s30 }
  0x1c   :  { %p99_p0 = por %p98_p13, %p97_p12 }
  0x1e   :  { %p100_p1 = pnand %p99_p0, %p93_p11 }
  0x20   :  { %103 = shalt.err (!%p100_p1)
}
  0x21   :  { %29 = dma.hbm_to_vmem [thread:$0]  %s187_s1, 128, %s27_s12, [#allocation6]  }
  0x22   :  { %126 = dma.done.wait [#allocation3], 128  }
  0x23   :  { %127 = vsyncadd [#allocation3], 4294967168 }
  0x24   :  { %128 = dma.done.wait [#allocation6], 128  }
  0x25   :  { %129 = vsyncadd [#allocation6], 4294967168  ;;  %s134_s4 = smov [#allocation7]   ;;  %v36_v0 = vld [vmem:[#allocation5] sm:$0xff]  ;;  %v37_v1 = vld [vmem:[#allocation2] sm:$0xff]  ;;  %vm39_vm0 = vcmask 523264  }
  0x26   :  { %s47_s5 = sshll.u32 %s134_s4, 4  ;;  %v38_v2 = vadd.f32 %v37_v1, %v36_v0  ;;  %s48_s5 = int_to_ptr.vmem [resolvable:$true] %s47_s5 }
  0x27   :  { %s104_s6 = scalar_lea.vmem %s48_s5, 128  ;;  %p109_p3 = scmp.lt.s32.totalorder %s48_s5, %s48_s5 }
  0x28   :  { %40 = vst.msk [vmem:[#allocation7] sm:$0xff] %vm39_vm0, %v38_v2  ;;  %p105_p2 = scmp.ne.s32.totalorder %s48_s5, %s104_s6  ;;  %p110_p4 = scmp.lt.s32.totalorder %s104_s6, %s104_s6 }
  0x2a   :  { %p111_p5 = por %p110_p4, %p109_p3 }
  0x2c   :  { %p112_p6 = pnand %p111_p5, %p105_p2 }
  0x2e   :  { %115 = shalt.err (!%p112_p6)
}
  0x2f   :  { %s116_s8 = scalar_lea.hbm %s188_s2, 128 }
  0x30   :  { %p117_p7 = scmp.ne.s32.totalorder %s188_s2, %s116_s8  ;;  %p120_p8 = scmp.lt.u32.totalorder %s116_s8, %s188_s2 }
  0x32   :  { %p122_p9 = pnand %p120_p8, %p117_p7 }
  0x34   :  { %125 = shalt.err (!%p122_p9)
}
  0x35   :  { %50 = dma.vmem_to_hbm [thread:$0]  %s48_s5, 128, %s188_s2, [#allocation4]  }
  0x36   :  { %130 = dma.done.wait [#allocation4], 128  }
  0x37   :  { %131 = vsyncadd [#allocation4], 4294967168 }
  0x38   :  { %54 = vsyncpa [#allocation3], 1 }
  0x39   :  { %55 = vsyncpa [#allocation6], 1 }
  0x3a   :  { %56 = vsyncpa [#allocation4], 1 }

</bundles_post_ra>
